<compile_context>
chip_gen: v6e
topology: v6e:2x2x1
jax: 0.10.0
libtpu: 0.0.40
codegen_flags: <defaults>
</compile_context>

<pallas_src>
import functools

import jax
import jax.numpy as jnp
from jax.experimental import pallas as pl
from jax.experimental.pallas import tpu as pltpu

IN_FEATURES = 3
OUT_FEATURES = 3
LANES = 128          # vreg lane width
SUBLANES = 8         # f32 vreg sublane count

# Default tile: 128K batch elements = 1024 lane-rows.  Sweepable; ~32K is
# already enough on v5e's slower HBM, larger helps v6e/v7x amortize step cost.
DEFAULT_TILE_B = 128 * 1024


def _round_up(n, m):
    return ((n + m - 1) // m) * m


def _linear_kernel(x_ref, w_ref, b_ref, o_ref):
    # x_ref: (IN, Tr, 128)  f32 VMEM  -- batch lane-dense (Tr = tile // 128)
    # w_ref: (OUT, IN)      f32 SMEM  -- PyTorch (out, in) layout
    # b_ref: (OUT,)         f32 SMEM
    # o_ref: (OUT, Tr, 128) f32 VMEM
    xs = [x_ref[i] for i in range(IN_FEATURES)]      # full dense (Tr, 128) slabs
    for o in range(OUT_FEATURES):                    # statically unrolled: 9 FMAs + 3 adds
        acc = xs[0] * w_ref[o, 0]
        for i in range(1, IN_FEATURES):
            acc = acc + xs[i] * w_ref[o, i]
        o_ref[o] = acc + b_ref[o]                    # full-width unmasked store


@functools.partial(jax.jit, static_argnames=("tile_b",))
def linear_feature_major(x_fm, weight, bias, *, tile_b=DEFAULT_TILE_B):
    """Pallas path with NO layout plumbing.

    x_fm: (IN, B) f32 feature-major (batch on the lane axis), B % 128 == 0.
    Returns (OUT, B) f32.  Use this entry point when the surrounding graph
    keeps activations feature-major (avoids the wrapper transposes entirely).
    """
    assert x_fm.shape[0] == IN_FEATURES
    B = x_fm.shape[1]
    assert B % LANES == 0, "feature-major batch must be a multiple of 128"
    R = B // LANES
    x3 = x_fm.reshape(IN_FEATURES, R, LANES)         # free row-major reshape

    if R <= SUBLANES:
        tr = R                                       # single full-extent block
    else:
        # Tile rows: multiple of 8 (dense (8,128) vregs), capped at ceil(R/2)
        # so the "parallel" batch axis always has >=2 steps (v7x megacore).
        tr = min(tile_b // LANES, _round_up((R + 1) // 2, SUBLANES))
    grid = (pl.cdiv(R, tr),)

    out3 = pl.pallas_call(
        _linear_kernel,
        out_shape=jax.ShapeDtypeStruct((OUT_FEATURES, R, LANES), x_fm.dtype),
        grid_spec=pltpu.PrefetchScalarGridSpec(
            num_scalar_prefetch=0,
            grid=grid,
            in_specs=[
                # Activations: tiled along the batch axis, double-buffered.
                pl.BlockSpec((IN_FEATURES, tr, LANES), lambda i: (0, i, 0)),
                # 3x3 weight + 3 bias: resident SMEM scalars, no per-step DMA.
                pl.BlockSpec(memory_space=pltpu.MemorySpace.SMEM),
                pl.BlockSpec(memory_space=pltpu.MemorySpace.SMEM),
            ],
            out_specs=pl.BlockSpec((OUT_FEATURES, tr, LANES), lambda i: (0, i, 0)),
        ),
        compiler_params=pltpu.CompilerParams(
            dimension_semantics=("parallel",)),      # shards across v7x's 2 TCs
    )(x3, weight, bias)

    return out3.reshape(OUT_FEATURES, B)


@functools.partial(jax.jit, static_argnames=("tile_b",))
def softmax_classifier_forward(x, weight, bias, *, tile_b=DEFAULT_TILE_B):
    """nn.Linear(3,3)-compatible forward: x (B, 3) -> (B, 3).

    The transpose/pad here is boundary layout plumbing only; inside a larger
    graph keep activations feature-major and call linear_feature_major directly
    to avoid the extra HBM round-trips.
    """
    B = x.shape[0]
    Bp = _round_up(max(B, 1), LANES)
    x_fm = x.T                                       # (IN, B)
    if Bp != B:
        x_fm = jnp.pad(x_fm, ((0, 0), (0, Bp - B)))
    out_fm = linear_feature_major(x_fm, weight, bias, tile_b=tile_b)
    return out_fm[:, :B].T                           # back to (B, OUT)


if __name__ == "__main__":
    key = jax.random.PRNGKey(0)
    kx, kw, kb = jax.random.split(key, 3)

    # nn.Linear-style init: uniform(-1/sqrt(in_features), 1/sqrt(in_features)).
    bound = 1.0 / jnp.sqrt(jnp.float32(IN_FEATURES))
    weight = jax.random.uniform(kw, (OUT_FEATURES, IN_FEATURES),
                                minval=-bound, maxval=bound, dtype=jnp.float32)
    bias = jax.random.uniform(kb, (OUT_FEATURES,),
                              minval=-bound, maxval=bound, dtype=jnp.float32)

    # 1) Small batch, module-compatible wrapper (single full-extent block).
    x_small = jax.random.normal(kx, (8, IN_FEATURES), dtype=jnp.float32)
    out_small = softmax_classifier_forward(x_small, weight, bias)
    jax.block_until_ready(out_small)
    ref_small = x_small @ weight.T + bias
    assert out_small.shape == (8, OUT_FEATURES)
    assert jnp.allclose(out_small, ref_small, atol=1e-5, rtol=1e-5)

    # 2) Feature-major path, >=2 grid steps with dense (8,128) blocks.
    x_fm = jax.random.normal(kx, (IN_FEATURES, 2048), dtype=jnp.float32)
    out_fm = linear_feature_major(x_fm, weight, bias)
    jax.block_until_ready(out_fm)
    ref_fm = weight @ x_fm + bias[:, None]
    assert out_fm.shape == (OUT_FEATURES, 2048)
    assert jnp.allclose(out_fm, ref_fm, atol=1e-5, rtol=1e-5)

    # 3) Feature-major path with a partial tail block (R=10 rows, tile=8 rows).
    x_fm2 = jax.random.normal(kx, (IN_FEATURES, 1280), dtype=jnp.float32)
    out_fm2 = linear_feature_major(x_fm2, weight, bias)
    jax.block_until_ready(out_fm2)
    ref_fm2 = weight @ x_fm2 + bias[:, None]
    assert jnp.allclose(out_fm2, ref_fm2, atol=1e-5, rtol=1e-5)

    print("KERNEL_OK")
</pallas_src>

<mosaic_0001>
module attributes {stable_mosaic.version = 11 : i64} {
  func.func @_linear_kernel(%arg0: i32, %arg1: memref<3x1x128xf32, #tpu.memory_space<vmem>>, %arg2: memref<3x3xf32, #tpu.memory_space<smem>>, %arg3: memref<3xf32, #tpu.memory_space<smem>>, %arg4: memref<3x1x128xf32, #tpu.memory_space<vmem>>) attributes {dimension_semantics = [#tpu.dimension_semantics<parallel>], iteration_bounds = array<i64: 1>, scalar_prefetch = 0 : i64, scratch_operands = 0 : i64, tpu.core_type = #tpu.core_type<tc>, window_params = [{transform_indices = @transform_0, window_bounds = array<i64: 3, 1, 128>}, {transform_indices = @transform_1, window_bounds = array<i64: 3, 3>}, {transform_indices = @transform_2, window_bounds = array<i64: 3>}, {transform_indices = @transform_3, window_bounds = array<i64: 3, 1, 128>}]} {
    %c0 = arith.constant 0 : index
    %c0_0 = arith.constant 0 : index
    %c0_1 = arith.constant 0 : index
    %0 = vector.load %arg1[%c0, %c0_0, %c0_1] : memref<3x1x128xf32, #tpu.memory_space<vmem>>, vector<1x1x128xf32>
    %1 = vector.shape_cast %0 : vector<1x1x128xf32> to vector<1x128xf32>
    %c1 = arith.constant 1 : index
    %c0_2 = arith.constant 0 : index
    %c0_3 = arith.constant 0 : index
    %2 = vector.load %arg1[%c1, %c0_2, %c0_3] : memref<3x1x128xf32, #tpu.memory_space<vmem>>, vector<1x1x128xf32>
    %3 = vector.shape_cast %2 : vector<1x1x128xf32> to vector<1x128xf32>
    %c2 = arith.constant 2 : index
    %c0_4 = arith.constant 0 : index
    %c0_5 = arith.constant 0 : index
    %4 = vector.load %arg1[%c2, %c0_4, %c0_5] : memref<3x1x128xf32, #tpu.memory_space<vmem>>, vector<1x1x128xf32>
    %5 = vector.shape_cast %4 : vector<1x1x128xf32> to vector<1x128xf32>
    %c0_6 = arith.constant 0 : index
    %c0_7 = arith.constant 0 : index
    %6 = memref.load %arg2[%c0_6, %c0_7] : memref<3x3xf32, #tpu.memory_space<smem>>
    %7 = vector.broadcast %6 : f32 to vector<1x128xf32>
    %8 = arith.mulf %1, %7 : vector<1x128xf32>
    %c0_8 = arith.constant 0 : index
    %c1_9 = arith.constant 1 : index
    %9 = memref.load %arg2[%c0_8, %c1_9] : memref<3x3xf32, #tpu.memory_space<smem>>
    %10 = vector.broadcast %9 : f32 to vector<1x128xf32>
    %11 = arith.mulf %3, %10 : vector<1x128xf32>
    %12 = arith.addf %8, %11 : vector<1x128xf32>
    %c0_10 = arith.constant 0 : index
    %c2_11 = arith.constant 2 : index
    %13 = memref.load %arg2[%c0_10, %c2_11] : memref<3x3xf32, #tpu.memory_space<smem>>
    %14 = vector.broadcast %13 : f32 to vector<1x128xf32>
    %15 = arith.mulf %5, %14 : vector<1x128xf32>
    %16 = arith.addf %12, %15 : vector<1x128xf32>
    %c0_12 = arith.constant 0 : index
    %17 = memref.load %arg3[%c0_12] : memref<3xf32, #tpu.memory_space<smem>>
    %18 = vector.broadcast %17 : f32 to vector<1x128xf32>
    %19 = arith.addf %16, %18 : vector<1x128xf32>
    %c0_13 = arith.constant 0 : index
    %c0_14 = arith.constant 0 : index
    %c0_15 = arith.constant 0 : index
    %20 = vector.load %arg4[%c0_13, %c0_14, %c0_15] : memref<3x1x128xf32, #tpu.memory_space<vmem>>, vector<1x1x128xf32>
    %21 = vector.shape_cast %20 : vector<1x1x128xf32> to vector<1x128xf32>
    %22 = vector.shape_cast %19 : vector<1x128xf32> to vector<1x1x128xf32>
    tpu.vector_store %arg4[%c0_13, %c0_14, %c0_15], %22 {strides = array<i32>} : memref<3x1x128xf32, #tpu.memory_space<vmem>>, vector<1x1x128xf32>,
    %c1_16 = arith.constant 1 : index
    %c0_17 = arith.constant 0 : index
    %23 = memref.load %arg2[%c1_16, %c0_17] : memref<3x3xf32, #tpu.memory_space<smem>>
    %24 = vector.broadcast %23 : f32 to vector<1x128xf32>
    %25 = arith.mulf %1, %24 : vector<1x128xf32>
    %c1_18 = arith.constant 1 : index
    %c1_19 = arith.constant 1 : index
    %26 = memref.load %arg2[%c1_18, %c1_19] : memref<3x3xf32, #tpu.memory_space<smem>>
    %27 = vector.broadcast %26 : f32 to vector<1x128xf32>
    %28 = arith.mulf %3, %27 : vector<1x128xf32>
    %29 = arith.addf %25, %28 : vector<1x128xf32>
    %c1_20 = arith.constant 1 : index
    %c2_21 = arith.constant 2 : index
    %30 = memref.load %arg2[%c1_20, %c2_21] : memref<3x3xf32, #tpu.memory_space<smem>>
    %31 = vector.broadcast %30 : f32 to vector<1x128xf32>
    %32 = arith.mulf %5, %31 : vector<1x128xf32>
    %33 = arith.addf %29, %32 : vector<1x128xf32>
    %c1_22 = arith.constant 1 : index
    %34 = memref.load %arg3[%c1_22] : memref<3xf32, #tpu.memory_space<smem>>
    %35 = vector.broadcast %34 : f32 to vector<1x128xf32>
    %36 = arith.addf %33, %35 : vector<1x128xf32>
    %c1_23 = arith.constant 1 : index
    %c0_24 = arith.constant 0 : index
    %c0_25 = arith.constant 0 : index
    %37 = vector.load %arg4[%c1_23, %c0_24, %c0_25] : memref<3x1x128xf32, #tpu.memory_space<vmem>>, vector<1x1x128xf32>
    %38 = vector.shape_cast %37 : vector<1x1x128xf32> to vector<1x128xf32>
    %39 = vector.shape_cast %36 : vector<1x128xf32> to vector<1x1x128xf32>
    tpu.vector_store %arg4[%c1_23, %c0_24, %c0_25], %39 {strides = array<i32>} : memref<3x1x128xf32, #tpu.memory_space<vmem>>, vector<1x1x128xf32>,
    %c2_26 = arith.constant 2 : index
    %c0_27 = arith.constant 0 : index
    %40 = memref.load %arg2[%c2_26, %c0_27] : memref<3x3xf32, #tpu.memory_space<smem>>
    %41 = vector.broadcast %40 : f32 to vector<1x128xf32>
    %42 = arith.mulf %1, %41 : vector<1x128xf32>
    %c2_28 = arith.constant 2 : index
    %c1_29 = arith.constant 1 : index
    %43 = memref.load %arg2[%c2_28, %c1_29] : memref<3x3xf32, #tpu.memory_space<smem>>
    %44 = vector.broadcast %43 : f32 to vector<1x128xf32>
    %45 = arith.mulf %3, %44 : vector<1x128xf32>
    %46 = arith.addf %42, %45 : vector<1x128xf32>
    %c2_30 = arith.constant 2 : index
    %c2_31 = arith.constant 2 : index
    %47 = memref.load %arg2[%c2_30, %c2_31] : memref<3x3xf32, #tpu.memory_space<smem>>
    %48 = vector.broadcast %47 : f32 to vector<1x128xf32>
    %49 = arith.mulf %5, %48 : vector<1x128xf32>
    %50 = arith.addf %46, %49 : vector<1x128xf32>
    %c2_32 = arith.constant 2 : index
    %51 = memref.load %arg3[%c2_32] : memref<3xf32, #tpu.memory_space<smem>>
    %52 = vector.broadcast %51 : f32 to vector<1x128xf32>
    %53 = arith.addf %50, %52 : vector<1x128xf32>
    %c2_33 = arith.constant 2 : index
    %c0_34 = arith.constant 0 : index
    %c0_35 = arith.constant 0 : index
    %54 = vector.load %arg4[%c2_33, %c0_34, %c0_35] : memref<3x1x128xf32, #tpu.memory_space<vmem>>, vector<1x1x128xf32>
    %55 = vector.shape_cast %54 : vector<1x1x128xf32> to vector<1x128xf32>
    %56 = vector.shape_cast %53 : vector<1x128xf32> to vector<1x1x128xf32>
    tpu.vector_store %arg4[%c2_33, %c0_34, %c0_35], %56 {strides = array<i32>} : memref<3x1x128xf32, #tpu.memory_space<vmem>>, vector<1x1x128xf32>,
    return
  }
  func.func @transform_0(%arg0: i32) -> (i32, i32, i32) {
    %c0_i32 = arith.constant 0 : i32
    %c0_i32_0 = arith.constant 0 : i32
    %c0_i32_1 = arith.constant 0 : i32
    return %c0_i32, %arg0, %c0_i32_0 : i32, i32, i32
  }
  func.func @transform_1(%arg0: i32) -> (i32, i32) {
    %c0_i32 = arith.constant 0 : i32
    %c0_i32_0 = arith.constant 0 : i32
    %c0_i32_1 = arith.constant 0 : i32
    return %c0_i32, %c0_i32_0 : i32, i32
  }
  func.func @transform_2(%arg0: i32) -> i32 {
    %c0_i32 = arith.constant 0 : i32
    %c0_i32_0 = arith.constant 0 : i32
    return %c0_i32 : i32
  }
  func.func @transform_3(%arg0: i32) -> (i32, i32, i32) {
    %c0_i32 = arith.constant 0 : i32
    %c0_i32_0 = arith.constant 0 : i32
    %c0_i32_1 = arith.constant 0 : i32
    return %c0_i32, %arg0, %c0_i32_0 : i32, i32, i32
  }
}

</mosaic_0001>

<bundles_post_ra>
// kernel: linear_feature_major.1
= control target key start
LH: loop header
LB: loop body
LE: loop exit
PB: predicated region body
PF: predicated region fallthrough
CT: control target
= control target key end

     0   :  { %8 = vsyncpa [#allocation3], 0  ;;  %s187_s0 = inlined_call_operand.vmem [shape: f32[3,1,128], index: 0, kind: input, shape index: {}]   ;;  %s188_s1 = inlined_call_operand.vmem [shape: f32[3,3], index: 1, kind: input, shape index: {}]   ;;  %s189_s2 = inlined_call_operand.vmem [shape: f32[3], index: 2, kind: input, shape index: {}]   ;;  %s190_s3 = inlined_call_operand.vmem [shape: f32[3,1,128], index: 3, kind: output, shape index: {}]  }
   0x1   :  { %s18_s14 = sshll.u32 %s188_s1, 4  ;;  %s19_s14 = int_to_ptr.vmem [resolvable:$true] %s18_s14 }
   0x2   :  { %9 = vsyncpa [#allocation5], 0  ;;  %s28_s17 = sshll.u32 %s189_s2, 4  ;;  %s113_s18 = scalar_lea.vmem %s19_s14, 64  ;;  %s29_s17 = int_to_ptr.vmem [resolvable:$true] %s28_s17 }
   0x3   :  { %p114_p0 = scmp.ne.s32.totalorder %s19_s14, %s113_s18  ;;  %p118_p1 = scmp.lt.s32.totalorder %s19_s14, %s19_s14 }
   0x4   :  { %p119_p2 = scmp.lt.s32.totalorder %s113_s18, %s113_s18 }
   0x6   :  { %p120_p3 = por %p119_p2, %p118_p1 }
   0x8   :  { %p121_p4 = pnand %p120_p3, %p114_p0 }
   0xa   :  { %124 = shalt.err (!%p121_p4)
}
   0xb   :  { %s141_s19 = smov [#allocation2]   ;;  %s125_s20 = scalar_lea.vmem %s29_s17, 16 }
   0xc   :  { %21 = dma.vmem_to_smem %s19_s14, 64, %s141_s19, [#allocation3]  }
   0xd   :  { %p126_p5 = scmp.ne.s32.totalorder %s29_s17, %s125_s20  ;;  %p130_p6 = scmp.lt.s32.totalorder %s29_s17, %s29_s17 }
   0xe   :  { %p131_p7 = scmp.lt.s32.totalorder %s125_s20, %s125_s20 }
  0x10   :  { %p132_p8 = por %p131_p7, %p130_p6 }
  0x12   :  { %p133_p9 = pnand %p132_p8, %p126_p5 }
  0x14   :  { %136 = shalt.err (!%p133_p9)
}
  0x15   :  { %s142_s1 = smov [#allocation4]  }
  0x16   :  { %31 = dma.vmem_to_smem %s29_s17, 16, %s142_s1, [#allocation5]  }
  0x17   :  { %137 = dma.done.wait [#allocation3], 64  }
  0x18   :  { %138 = vsyncadd [#allocation3], 4294967232 }
  0x19   :  { %139 = dma.done.wait [#allocation5], 16  }
  0x1a   :  { %140 = vsyncadd [#allocation5], 4294967280 }
  0x1b   :  { %38 = sfence }
  0x1c   :  { %s44_s2 = sld [smem:[#allocation2]]  ;;  %v39_v0 = vld [vmem:[%s187_s0] sm:$0x1]  ;;  %v97_v1 = vld [vmem:[%s187_s0 + $0x1] sm:$0x1] }
  0x1d   :  { %s99_s21 = sld [smem:[#allocation2 + $0x1]]  ;;  %v98_v2 = vld [vmem:[%s187_s0 + $0x2] sm:$0x1] }
  0x1e   :  { %s100_s22 = sld [smem:[#allocation2 + $0x2]] }
  0x1f   :  { %s55_s23 = sld [smem:[#allocation4]] }
  0x20   :  { %s101_s26 = sld [smem:[#allocation2 + $0x80]] }
  0x21   :  { %s102_s29 = sld [smem:[#allocation2 + $0x81]] }
  0x22   :  { %v45_v3 = vstv %s44_s2  ;;  %s103_s5 = sld [smem:[#allocation2 + $0x82]] }
  0x23   :  { %v46_v4 = vmul.f32 %v45_v3, %v39_v0  ;;  %v48_v5 = vstv %s99_s21  ;;  %s104_s6 = sld [smem:[#allocation4 + $0x1]] }
  0x24   :  { %v49_v6 = vmul.f32 %v97_v1, %v48_v5  ;;  %v52_v7 = vstv %s100_s22  ;;  %s106_s7 = sld [smem:[#allocation2 + $0x100]] }
  0x25   :  { %v53_v8 = vmul.f32 %v98_v2, %v52_v7  ;;  %s107_s8 = sld [smem:[#allocation2 + $0x101]]  ;;  %v56_v11 = vstv %s55_s23 }
  0x26   :  { %v50_v9 = vadd.f32 %v49_v6, %v46_v4  ;;  %v60_v10 = vstv %s101_s26  ;;  %s108_s9 = sld [smem:[#allocation2 + $0x102]] }
  0x27   :  { %v61_v12 = vmul.f32 %v60_v10, %v39_v0  ;;  %v63_v13 = vstv %s102_s29  ;;  %s109_s10 = sld [smem:[#allocation4 + $0x2]] }
  0x28   :  { %v54_v14 = vadd.f32 %v53_v8, %v50_v9  ;;  %v64_v15 = vmul.f32 %v97_v1, %v63_v13  ;;  %v67_v16 = vstv %s103_s5 }
  0x29   :  { %v68_v17 = vmul.f32 %v98_v2, %v67_v16  ;;  %v71_v21 = vstv %s104_s6 }
  0x2a   :  { %v57_v18 = vadd.f32 %v56_v11, %v54_v14  ;;  %v65_v19 = vadd.f32 %v64_v15, %v61_v12  ;;  %v76_v20 = vstv %s106_s7 }
  0x2b   :  { %v77_v22 = vmul.f32 %v76_v20, %v39_v0  ;;  %v79_v23 = vstv %s107_s8 }
  0x2c   :  { %58 = vst [vmem:[%s190_s3] sm:$0x1] %v57_v18  ;;  %v69_v24 = vadd.f32 %v68_v17, %v65_v19  ;;  %v80_v25 = vmul.f32 %v97_v1, %v79_v23  ;;  %v83_v26 = vstv %s108_s9 }
  0x2d   :  { %v84_v27 = vmul.f32 %v98_v2, %v83_v26  ;;  %v87_v30 = vstv %s109_s10 }
  0x2e   :  { %v72_v28 = vadd.f32 %v71_v21, %v69_v24  ;;  %v81_v29 = vadd.f32 %v80_v25, %v77_v22 }
  0x30   :  { %105 = vst [vmem:[%s190_s3 + $0x1] sm:$0x1] %v72_v28  ;;  %v85_v31 = vadd.f32 %v84_v27, %v81_v29 }
  0x32   :  { %v88_v32 = vadd.f32 %v87_v30, %v85_v31 }
  0x34   :  { %110 = vst [vmem:[%s190_s3 + $0x2] sm:$0x1] %v88_v32 }
  0x35   :  { %95 = vsyncpa [#allocation3], 1 }
  0x36   :  { %96 = vsyncpa [#allocation5], 1 }

</bundles_post_ra>
